<compile_context>
chip_gen: v5e
topology: v5e:2x2
jax: 0.10.0
libtpu: 0.0.40
codegen_flags: <defaults>
</compile_context>

<pallas_src>
import functools
import math

import jax
import jax.numpy as jnp
from jax.experimental import pallas as pl
from jax.experimental.pallas import tpu as pltpu

_LOG_SQRT_2PI = 0.5 * math.log(2.0 * math.pi)


def _mdn_loss_kernel(slab_ref, t_ref, out_ref, *, n_valid):
    tile_r, lanes = t_ref.shape
    g = slab_ref.shape[0] // 3

    logits = slab_ref[0:g].astype(jnp.float32)            # (G, tile_r, 128)
    mu = slab_ref[g:2 * g].astype(jnp.float32)            # (G, tile_r, 128)
    log_sigma = slab_ref[2 * g:3 * g].astype(jnp.float32) # (G, tile_r, 128)
    t = t_ref[...].astype(jnp.float32)                    # (tile_r, 128)

    # Normal(mu, exp(log_sigma)).log_prob(t), fused form (no divides).
    diff = t[None, :, :] - mu
    log_prob = (-0.5 * diff * diff * jnp.exp(-2.0 * log_sigma)
                - log_sigma - _LOG_SQRT_2PI)               # (G, tile_r, 128)

    # -loss = logsumexp_g(logits) - logsumexp_g(logits + log_prob)
    # Reductions are over the leading axis -> elementwise max/add on the VPU.
    a = logits + log_prob
    m1 = jnp.max(a, axis=0)
    lse1 = jnp.log(jnp.sum(jnp.exp(a - m1[None]), axis=0)) + m1
    m2 = jnp.max(logits, axis=0)
    lse2 = jnp.log(jnp.sum(jnp.exp(logits - m2[None]), axis=0)) + m2
    neg_loss = lse2 - lse1                                 # (tile_r, 128)

    # Mask the zero-padded tail rows.
    row_ids = jax.lax.broadcasted_iota(jnp.int32, (tile_r, lanes), 0)
    col_ids = jax.lax.broadcasted_iota(jnp.int32, (tile_r, lanes), 1)
    flat = (row_ids + pl.program_id(0) * tile_r) * lanes + col_ids
    neg_loss = jnp.where(flat < n_valid, neg_loss, 0.0)

    # One cross-lane reduce per tile, stored as this tile's partial sum.
    out_ref[0, 0] = jnp.sum(neg_loss)


def mdn_loss(x, target, gaussians_count, tile_r=512):
    """Pallas implementation of MDNLoss.forward; returns shape (1,) float32."""
    b = x.shape[0]
    g = gaussians_count
    est = x.reshape(b, -1, g, 3)
    d = est.shape[1]
    n = b * d

    # One fused transpose to a single lane-dense slab: (3*G, N).
    slab = jnp.transpose(est.reshape(n, g, 3).astype(jnp.float32), (2, 1, 0))
    slab = slab.reshape(3 * g, n)

    # Row-axis padding / tiling (sublane-aligned, multiple of tile_r rows).
    rows = -(-n // 128)                     # ceil(N / 128) lane-rows
    rows = -(-rows // 8) * 8                # sublane-align
    tile_r = max(8, (min(tile_r, rows) // 8) * 8)
    # Keep the double-buffered working set well under the default scoped-VMEM
    # limit on every generation (v5e 16 MiB scoped, v7x 64 MiB physical).
    while tile_r > 8 and 2 * (3 * g + 1) * tile_r * 128 * 4 > 12 * 1024 * 1024:
        tile_r //= 2
    rows_p = -(-rows // tile_r) * tile_r
    n_pad = rows_p * 128

    slab = jnp.pad(slab, ((0, 0), (0, n_pad - n))).reshape(3 * g, rows_p, 128)
    t = jnp.pad(target.reshape(-1).astype(jnp.float32),
                (0, n_pad - n)).reshape(rows_p, 128)

    num_tiles = rows_p // tile_r

    partials = pl.pallas_call(
        functools.partial(_mdn_loss_kernel, n_valid=n),
        out_shape=jax.ShapeDtypeStruct((num_tiles, 1), jnp.float32),
        grid_spec=pltpu.PrefetchScalarGridSpec(
            num_scalar_prefetch=0,
            grid=(num_tiles,),
            in_specs=[
                pl.BlockSpec((3 * g, tile_r, 128), lambda i: (0, i, 0)),
                pl.BlockSpec((tile_r, 128), lambda i: (i, 0)),
            ],
            out_specs=pl.BlockSpec(
                (1, 1), lambda i: (i, 0), memory_space=pltpu.MemorySpace.SMEM
            ),
        ),
        compiler_params=pltpu.CompilerParams(
            dimension_semantics=("parallel",),
        ),
    )(slab, t)

    # mean(-loss) over all B*D rows, shape (1,) like torch's unsqueeze(0).
    return (jnp.sum(partials) / jnp.float32(n)).reshape(1)


def mdn_loss_ref(x, target, gaussians_count):
    """Pure-JAX reference mirroring the PyTorch forward."""
    b = x.shape[0]
    est = x.reshape(b, -1, gaussians_count, 3)
    pi = jax.nn.softmax(est[..., 0], axis=-1)
    mu = est[..., 1]
    sigma = jnp.exp(est[..., 2])
    t = target[:, :, None]
    log_prob = (
        -((t - mu) ** 2) / (2.0 * sigma * sigma) - jnp.log(sigma) - _LOG_SQRT_2PI
    )
    max_lp = jnp.max(log_prob, axis=2, keepdims=True)
    loss = jnp.sum(pi * jnp.exp(log_prob - max_lp), axis=2)
    loss = jnp.log(loss) + max_lp[:, :, 0]
    return jnp.mean(-loss).reshape(1)


if __name__ == "__main__":
    key = jax.random.PRNGKey(0)

    # Test 1: small canonical case (B=2, D=8, G=4).
    gaussians_count = 4
    B, D = 2, 8
    kx, kt, kx2, kt2 = jax.random.split(key, 4)
    x = jax.random.normal(kx, (B, D * gaussians_count * 3), dtype=jnp.float32)
    target = jax.random.normal(kt, (B, D), dtype=jnp.float32)

    out = mdn_loss(x, target, gaussians_count)
    jax.block_until_ready(out)
    ref = mdn_loss_ref(x, target, gaussians_count)
    assert out.shape == (1,)
    assert jnp.allclose(out, ref, rtol=1e-4, atol=1e-4), (out, ref)

    # Test 2: N not a multiple of 128 / tile size (exercises tail masking), G=5.
    g2, B2, D2 = 5, 3, 100
    x2 = jax.random.normal(kx2, (B2, D2 * g2 * 3), dtype=jnp.float32)
    target2 = jax.random.normal(kt2, (B2, D2), dtype=jnp.float32)
    out2 = mdn_loss(x2, target2, g2)
    jax.block_until_ready(out2)
    ref2 = mdn_loss_ref(x2, target2, g2)
    assert out2.shape == (1,)
    assert jnp.allclose(out2, ref2, rtol=1e-4, atol=1e-4), (out2, ref2)

    print("KERNEL_OK")
</pallas_src>

<mosaic_0001>
module attributes {stable_mosaic.version = 11 : i64} {
  func.func @_mdn_loss_kernel(%arg0: i32, %arg1: memref<12x8x128xf32, #tpu.memory_space<vmem>>, %arg2: memref<8x128xf32, #tpu.memory_space<vmem>>, %arg3: memref<1x1xf32, #tpu.memory_space<smem>>) attributes {dimension_semantics = [#tpu.dimension_semantics<parallel>], iteration_bounds = array<i64: 1>, scalar_prefetch = 0 : i64, scratch_operands = 0 : i64, tpu.core_type = #tpu.core_type<tc>, window_params = [{transform_indices = @transform_0, window_bounds = array<i64: 12, 8, 128>}, {transform_indices = @transform_1, window_bounds = array<i64: 8, 128>}, {transform_indices = @transform_2, window_bounds = array<i64: 1, 1>}]} {
    %c0 = arith.constant 0 : index
    %c0_0 = arith.constant 0 : index
    %c0_1 = arith.constant 0 : index
    %0 = vector.load %arg1[%c0, %c0_0, %c0_1] : memref<12x8x128xf32, #tpu.memory_space<vmem>>, vector<4x8x128xf32>
    %c4 = arith.constant 4 : index
    %c0_2 = arith.constant 0 : index
    %c0_3 = arith.constant 0 : index
    %1 = vector.load %arg1[%c4, %c0_2, %c0_3] : memref<12x8x128xf32, #tpu.memory_space<vmem>>, vector<4x8x128xf32>
    %c8 = arith.constant 8 : index
    %c0_4 = arith.constant 0 : index
    %c0_5 = arith.constant 0 : index
    %2 = vector.load %arg1[%c8, %c0_4, %c0_5] : memref<12x8x128xf32, #tpu.memory_space<vmem>>, vector<4x8x128xf32>
    %c0_6 = arith.constant 0 : index
    %c0_7 = arith.constant 0 : index
    %3 = vector.load %arg2[%c0_6, %c0_7] : memref<8x128xf32, #tpu.memory_space<vmem>>, vector<8x128xf32>
    %4 = vector.shape_cast %3 : vector<8x128xf32> to vector<1x8x128xf32>
    %5 = vector.broadcast %4 : vector<1x8x128xf32> to vector<4x8x128xf32>
    %6 = arith.subf %5, %1 : vector<4x8x128xf32>
    %cst = arith.constant -5.000000e-01 : f32
    %7 = vector.broadcast %cst : f32 to vector<4x8x128xf32>
    %8 = arith.mulf %7, %6 : vector<4x8x128xf32>
    %9 = arith.mulf %8, %6 : vector<4x8x128xf32>
    %cst_8 = arith.constant -2.000000e+00 : f32
    %10 = vector.broadcast %cst_8 : f32 to vector<4x8x128xf32>
    %11 = arith.mulf %10, %2 : vector<4x8x128xf32>
    %12 = math.exp %11 : vector<4x8x128xf32>
    %13 = arith.mulf %9, %12 : vector<4x8x128xf32>
    %14 = arith.subf %13, %2 : vector<4x8x128xf32>
    %cst_9 = arith.constant 0.918938517 : f32
    %15 = vector.broadcast %cst_9 : f32 to vector<4x8x128xf32>
    %16 = arith.subf %14, %15 : vector<4x8x128xf32>
    %17 = arith.addf %0, %16 : vector<4x8x128xf32>
    %cst_10 = arith.constant dense<0xFF800000> : vector<8x128xf32>
    %18 = vector.multi_reduction <maximumf>, %17, %cst_10 [0] : vector<4x8x128xf32> to vector<8x128xf32>
    %19 = vector.shape_cast %18 : vector<8x128xf32> to vector<1x8x128xf32>
    %20 = vector.broadcast %19 : vector<1x8x128xf32> to vector<4x8x128xf32>
    %21 = arith.subf %17, %20 : vector<4x8x128xf32>
    %22 = math.exp %21 : vector<4x8x128xf32>
    %cst_11 = arith.constant dense<0.000000e+00> : vector<8x128xf32>
    %23 = vector.multi_reduction <add>, %22, %cst_11 [0] : vector<4x8x128xf32> to vector<8x128xf32>
    %24 = math.log %23 : vector<8x128xf32>
    %25 = arith.addf %24, %18 : vector<8x128xf32>
    %cst_12 = arith.constant dense<0xFF800000> : vector<8x128xf32>
    %26 = vector.multi_reduction <maximumf>, %0, %cst_12 [0] : vector<4x8x128xf32> to vector<8x128xf32>
    %27 = vector.shape_cast %26 : vector<8x128xf32> to vector<1x8x128xf32>
    %28 = vector.broadcast %27 : vector<1x8x128xf32> to vector<4x8x128xf32>
    %29 = arith.subf %0, %28 : vector<4x8x128xf32>
    %30 = math.exp %29 : vector<4x8x128xf32>
    %cst_13 = arith.constant dense<0.000000e+00> : vector<8x128xf32>
    %31 = vector.multi_reduction <add>, %30, %cst_13 [0] : vector<4x8x128xf32> to vector<8x128xf32>
    %32 = math.log %31 : vector<8x128xf32>
    %33 = arith.addf %32, %26 : vector<8x128xf32>
    %34 = arith.subf %33, %25 : vector<8x128xf32>
    %35 = tpu.iota {dimensions = array<i32: 0>} : vector<8x128xi32>
    %36 = tpu.iota {dimensions = array<i32: 1>} : vector<8x128xi32>
    %c8_i32 = arith.constant 8 : i32
    %37 = arith.muli %arg0, %c8_i32 : i32
    %38 = vector.broadcast %37 : i32 to vector<8x128xi32>
    %39 = arith.addi %35, %38 : vector<8x128xi32>
    %c128_i32 = arith.constant 128 : i32
    %40 = vector.broadcast %c128_i32 : i32 to vector<8x128xi32>
    %41 = arith.muli %39, %40 : vector<8x128xi32>
    %42 = arith.addi %41, %36 : vector<8x128xi32>
    %c16_i32 = arith.constant 16 : i32
    %43 = vector.broadcast %c16_i32 : i32 to vector<8x128xi32>
    %44 = arith.cmpi slt, %42, %43 : vector<8x128xi32>
    %cst_14 = arith.constant 0.000000e+00 : f32
    %45 = vector.broadcast %cst_14 : f32 to vector<8x128xf32>
    %46 = arith.select %44, %34, %45 : vector<8x128xi1>, vector<8x128xf32>
    %47 = vector.shape_cast %46 : vector<8x128xf32> to vector<1x8x128xf32>
    %cst_15 = arith.constant dense<0.000000e+00> : vector<1xf32>
    %48 = vector.multi_reduction <add>, %47, %cst_15 [1, 2] : vector<1x8x128xf32> to vector<1xf32>
    %49 = vector.shape_cast %48 : vector<1xf32> to vector<1x1x1xf32>
    %50 = vector.extract %49[0, 0, 0] : f32 from vector<1x1x1xf32>
    %c0_16 = arith.constant 0 : index
    %c0_17 = arith.constant 0 : index
    %51 = memref.load %arg3[%c0_16, %c0_17] : memref<1x1xf32, #tpu.memory_space<smem>>
    memref.store %50, %arg3[%c0_16, %c0_17] : memref<1x1xf32, #tpu.memory_space<smem>>
    return
  }
  func.func @transform_0(%arg0: i32) -> (i32, i32, i32) {
    %c0_i32 = arith.constant 0 : i32
    %c0_i32_0 = arith.constant 0 : i32
    %c0_i32_1 = arith.constant 0 : i32
    return %c0_i32, %arg0, %c0_i32_0 : i32, i32, i32
  }
  func.func @transform_1(%arg0: i32) -> (i32, i32) {
    %c0_i32 = arith.constant 0 : i32
    %c0_i32_0 = arith.constant 0 : i32
    return %arg0, %c0_i32 : i32, i32
  }
  func.func @transform_2(%arg0: i32) -> (i32, i32) {
    %c0_i32 = arith.constant 0 : i32
    %c0_i32_0 = arith.constant 0 : i32
    return %arg0, %c0_i32 : i32, i32
  }
}

</mosaic_0001>

<bundles_post_ra>
// kernel: tpu_custom_call.1
= control target key start
LH: loop header
LB: loop body
LE: loop exit
PB: predicated region body
PF: predicated region fallthrough
CT: control target
= control target key end

     0   :  { %7 = vsyncpa [#allocation3], 0  ;;  %s335_s0 = inlined_call_operand.hbm [shape: f32[12,8,128], index: 0, kind: input, shape index: {}]   ;;  %s336_s1 = inlined_call_operand.hbm [shape: f32[8,128], index: 1, kind: input, shape index: {}]   ;;  %s337_s2 = inlined_call_operand.hbm [shape: f32[1,1], index: 2, kind: output, shape index: {}]  }
   0x1   :  { %8 = vsyncpa [#allocation6], 0 }
   0x2   :  { %9 = vsyncpa [#allocation4], 0  ;;  %s14_s11 = sshll.u32 %s335_s0, 4  ;;  %s284_s12 = smov [#allocation2]   ;;  %s15_s11 = int_to_ptr.hbm [resolvable:$true] %s14_s11 }
   0x3   :  { %s16_s13 = sshll.u32 %s284_s12, 4  ;;  %s28_s16 = sshll.u32 %s336_s1, 4  ;;  %s17_s13 = int_to_ptr.vmem [resolvable:$true] %s16_s13  ;;  %s29_s16 = int_to_ptr.hbm [resolvable:$true] %s28_s16 }
   0x4   :  { %s285_s17 = smov 128   ;;  %s286_s18 = smov 8  }
   0x5   :  { %22 = dma.hbm_to_vmem [thread:$0]  %s15_s11, 1536, %s17_s13, [#allocation3], %s285_s17, %s285_s17, %s286_s18  }
   0x6   :  { %s287_s19 = smov [#allocation5]  }
   0x7   :  { %s30_s20 = sshll.u32 %s287_s19, 4  ;;  %s31_s20 = int_to_ptr.vmem [resolvable:$true] %s30_s20 }
   0x8   :  { %33 = dma.hbm_to_vmem [thread:$0]  %s29_s16, 128, %s31_s20, [#allocation6]  }
   0x9   :  { %278 = dma.done.wait [#allocation3], 1536  }
   0xa   :  { %279 = vsyncadd [#allocation3], 4294965760 }
   0xb   :  { %280 = dma.done.wait [#allocation6], 128  }
   0xc   :  { %281 = vsyncadd [#allocation6], 4294967168  ;;  %v42_v0 = vld [vmem:[#allocation2] sm:$0xff]  ;;  %v310_v1 = vld [vmem:[#allocation2 + $0x8] sm:$0xff]  ;;  %s167_s21 = sshll.u32 %s337_s2, 4  ;;  %s288_s23 = smov [#allocation7]   ;;  %s168_s21 = int_to_ptr.hbm [resolvable:$true] %s167_s21 }
   0xd   :  { %v312_v2 = vld [vmem:[#allocation2 + $0x10] sm:$0xff]  ;;  %v314_v3 = vld [vmem:[#allocation2 + $0x18] sm:$0xff]  ;;  %v47_v4 = vld [vmem:[#allocation2 + $0x20] sm:$0xff]  ;;  %v118_v12 = vmax.f32 %v42_v0, %v310_v1 }
   0xe   :  { %v48_v5 = vld [vmem:[#allocation2 + $0x28] sm:$0xff]  ;;  %v49_v6 = vld [vmem:[#allocation2 + $0x30] sm:$0xff]  ;;  %v52_v7 = vld [vmem:[#allocation2 + $0x40] sm:$0xff]  ;;  %v119_v18 = vmax.f32 %v312_v2, %v314_v3 }
   0xf   :  { %v53_v8 = vld [vmem:[#allocation2 + $0x48] sm:$0xff]  ;;  %v54_v9 = vld [vmem:[#allocation2 + $0x50] sm:$0xff]  ;;  %v55_v10 = vld [vmem:[#allocation2 + $0x58] sm:$0xff]  ;;  %v69_v11 = vmul.f32 -2.0, %v52_v7 }
  0x10   :  { %v50_v13 = vld [vmem:[#allocation2 + $0x38] sm:$0xff]  ;;  %v56_v14 = vld [vmem:[#allocation5] sm:$0xff]  ;;  %v70_v15 = vmul.f32 -2.0, %v53_v8  ;;  %v71_v16 = vmul.f32 -2.0, %v54_v9  ;;  %v72_v17 = vmul.f32 -2.0, %v55_v10  ;;  %v319_v28 = vmax.f32 %v118_v12, %v119_v18 }
  0x11   :  { %v57_v19 = vsub.f32 %v56_v14, %v47_v4  ;;  %v58_v20 = vsub.f32 %v56_v14, %v48_v5  ;;  %v59_v21 = vsub.f32 %v56_v14, %v49_v6  ;;  %v73_v22 = vmul.f32 1.442695, %v69_v11 }
  0x12   :  { %v75_v23 = vmul.f32 1.442695, %v70_v15  ;;  %v60_v24 = vsub.f32 %v56_v14, %v50_v13  ;;  %v77_v26 = vmul.f32 1.442695, %v71_v16  ;;  %v79_v27 = vmul.f32 1.442695, %v72_v17 }
  0x13   :  { %v61_v25 = vmul.f32 -0.5, %v57_v19  ;;  %190 = vpow2.f32 %v73_v22  ;;  %v62_v29 = vmul.f32 -0.5, %v58_v20  ;;  %v63_v30 = vmul.f32 -0.5, %v59_v21 }
  0x14   :  { %192 = vpow2.f32 %v75_v23  ;;  %v64_v31 = vmul.f32 -0.5, %v60_v24  ;;  %v121_v33 = vsub.f32 %v42_v0, %v319_v28  ;;  %v122_v35 = vsub.f32 %v310_v1, %v319_v28 }
  0x15   :  { %v65_v32 = vmul.f32 %v61_v25, %v57_v19  ;;  %194 = vpow2.f32 %v77_v26  ;;  %v66_v34 = vmul.f32 %v62_v29, %v58_v20  ;;  %v67_v37 = vmul.f32 %v63_v30, %v59_v21 }
  0x16   :  { %196 = vpow2.f32 %v79_v27  ;;  %v68_v38 = vmul.f32 %v64_v31, %v60_v24  ;;  %v125_v41 = vmul.f32 1.442695, %v121_v33  ;;  %v127_v45 = vmul.f32 1.442695, %v122_v35 }
  0x17   :  { %v123_v48 = vsub.f32 %v312_v2, %v319_v28  ;;  %v124_v57 = vsub.f32 %v314_v3, %v319_v28  ;;  %v140_v22 = vlaneseq }
  0x18   :  { %198 = vpow2.f32 %v125_v41 }
  0x19   :  { %v191_v36 = vpop.eup %190  ;;  %200 = vpow2.f32 %v127_v45  ;;  %v129_v58 = vmul.f32 1.442695, %v123_v48  ;;  %v131_v5 = vmul.f32 1.442695, %v124_v57  ;;  %v141_v26 = vshrl.u32 %v140_v22, 7 }
  0x1a   :  { %v81_v39 = vmul.f32 %v191_v36, %v65_v32  ;;  %v193_v40 = vpop.eup %192  ;;  %v143_v29 = vand.u32 127, %v140_v22 }
  0x1b   :  { %v195_v42 = vpop.eup %194  ;;  %v82_v43 = vmul.f32 %v193_v40, %v66_v34  ;;  %202 = vpow2.f32 %v129_v58  ;;  %v147_v30 = vmul.u32 128, %v141_v26 }
  0x1c   :  { %v85_v44 = vsub.f32 %v81_v39, %v52_v7  ;;  %v197_v46 = vpop.eup %196  ;;  %v83_v47 = vmul.f32 %v195_v42, %v67_v37  ;;  %204 = vpow2.f32 %v131_v5 }
  0x1d   :  { %v84_v49 = vmul.f32 %v197_v46, %v68_v38  ;;  %v86_v50 = vsub.f32 %v82_v43, %v53_v8  ;;  %v148_v33 = vadd.s32 %v147_v30, %v143_v29 }
  0x1e   :  { %v179_v51 = vadd.f32 -0.9189385, %v85_v44  ;;  %v87_v52 = vsub.f32 %v83_v47, %v54_v9  ;;  %v199_v4 = vpop.eup %198 }
  0x1f   :  { %v88_v53 = vsub.f32 %v84_v49, %v55_v10  ;;  %v180_v54 = vadd.f32 -0.9189385, %v86_v50  ;;  %v201_v6 = vpop.eup %200  ;;  %vm149_vm0 = vcmp.lt.s32.totalorder %v148_v33, 16 }
  0x20   :  { %v93_v55 = vadd.f32 %v179_v51, %v42_v0  ;;  %v181_v56 = vadd.f32 -0.9189385, %v87_v52  ;;  %v133_v8 = vadd.f32 %v201_v6, %v199_v4 }
  0x21   :  { %v182_v59 = vadd.f32 -0.9189385, %v88_v53  ;;  %v94_v60 = vadd.f32 %v180_v54, %v310_v1  ;;  %v203_v13 = vpop.eup %202 }
  0x22   :  { %v95_v61 = vadd.f32 %v181_v56, %v312_v2  ;;  %v205_v16 = vpop.eup %204 }
  0x23   :  { %v96_v62 = vadd.f32 %v182_v59, %v314_v3  ;;  %v97_v63 = vmax.f32 %v93_v55, %v94_v60  ;;  %v134_v3 = vadd.f32 %v203_v13, %v133_v8 }
  0x25   :  { %v98_v7 = vmax.f32 %v95_v61, %v96_v62  ;;  %v135_v17 = vadd.f32 %v205_v16, %v134_v3 }
  0x27   :  { %v99_v0 = vmax.f32 %v97_v63, %v98_v7 }
  0x29   :  { %v100_v9 = vsub.f32 %v93_v55, %v99_v0  ;;  %v101_v10 = vsub.f32 %v94_v60, %v99_v0  ;;  %v102_v11 = vsub.f32 %v95_v61, %v99_v0  ;;  %v103_v12 = vsub.f32 %v96_v62, %v99_v0 }
  0x2b   :  { %v104_v14 = vmul.f32 1.442695, %v100_v9  ;;  %v106_v1 = vmul.f32 1.442695, %v101_v10  ;;  %v108_v15 = vmul.f32 1.442695, %v102_v11 }
  0x2c   :  { %v110_v2 = vmul.f32 1.442695, %v103_v12 }
  0x2d   :  { %206 = vpow2.f32 %v104_v14 }
  0x2e   :  { %208 = vpow2.f32 %v106_v1 }
  0x2f   :  { %210 = vpow2.f32 %v108_v15 }
  0x30   :  { %212 = vpow2.f32 %v110_v2 }
  0x31   :  { %214 = vlog2.f32 %v135_v17 }
  0x33   :  { %v207_v18 = vpop.eup %206 }
  0x34   :  { %v209_v19 = vpop.eup %208 }
  0x35   :  { %v211_v20 = vpop.eup %210  ;;  %v112_v21 = vadd.f32 %v209_v19, %v207_v18 }
  0x36   :  { %v213_v23 = vpop.eup %212 }
  0x37   :  { %v113_v24 = vadd.f32 %v211_v20, %v112_v21  ;;  %v215_v27 = vpop.eup %214 }
  0x38   :  { %v137_v31 = vmul.f32 0.6931472, %v215_v27 }
  0x39   :  { %v114_v25 = vadd.f32 %v213_v23, %v113_v24 }
  0x3a   :  { %v138_v35 = vadd.f32 %v137_v31, %v319_v28 }
  0x3b   :  { %216 = vlog2.f32 %v114_v25 }
  0x41   :  { %v217_v32 = vpop.eup %216 }
  0x42   :  { %v116_v34 = vmul.f32 0.6931472, %v217_v32 }
  0x44   :  { %v117_v36 = vadd.f32 %v116_v34, %v99_v0 }
  0x46   :  { %v139_v37 = vsub.f32 %v138_v35, %v117_v36 }
  0x48   :  { %v150_v38 = vsel %vm149_vm0, %v139_v37, 0.0 }
  0x49   :  { %151 = vadd.xlane.f32.xlu0 %v150_v38 }
  0xbc   :  { %v152_v39 = vpop.xlane.xlu0 %151 }
  0xbd   :  { %v153_v40 = vrot.slane %v152_v39, 4 }
  0xbf   :  { %v154_v41 = vadd.f32 %v153_v40, %v152_v39 }
  0xc1   :  { %v155_v42 = vrot.slane %v154_v41, 2 }
  0xc3   :  { %v156_v43 = vadd.f32 %v155_v42, %v154_v41 }
  0xc5   :  { %v157_v44 = vrot.slane %v156_v43, 1 }
  0xc7   :  { %v158_v45 = vadd.f32 %v157_v44, %v156_v43 }
  0xc9   :  { %183 = vpush %v158_v45 }
  0xfa   :  { %s184_s22 = spop %183 }
  0xfb   :  { %161 = sst [smem:[#allocation7]] %s184_s22 }
  0xfc   :  { %170 = dma.smem_to_hbm %s288_s23, 16, %s168_s21, [#allocation4]  }
  0xfd   :  { %282 = dma.done.wait [#allocation4], 16  }
  0xfe   :  { %283 = vsyncadd [#allocation4], 4294967280 }
  0xff   :  { %175 = sfence }
 0x100   :  { %176 = vsyncpa [#allocation3], 1 }
 0x101   :  { %177 = vsyncpa [#allocation6], 1 }
 0x102   :  { %178 = vsyncpa [#allocation4], 1 }

</bundles_post_ra>
